<compile_context>
chip_gen: v7x
topology: tpu7x:2x2x1
jax: 0.10.0
libtpu: 0.0.40
codegen_flags: <defaults>
</compile_context>

<pallas_src>
import functools

import numpy as np
import jax
import jax.numpy as jnp
from jax import lax
from jax.experimental import pallas as pl
from jax.experimental.pallas import tpu as pltpu


# ------------------------------ helpers ------------------------------------

def _round_up(x, m):
    return ((x + m - 1) // m) * m


def _choose_tile(dim, target, granule):
    """Largest multiple of `granule` that divides `dim` and is <= target.

    Precondition: dim is a multiple of `granule` (callers pad first)."""
    best = granule
    t = granule
    limit = min(target, dim)
    while t <= limit:
        if dim % t == 0:
            best = t
        t += granule
    return best


def _pad_to(x, shape):
    pads = [(0, s - d) for d, s in zip(x.shape, shape)]
    if any(p for _, p in pads):
        return jnp.pad(x, pads)
    return x


# --------------------- fused LayerNorm + matmul kernel ----------------------
# y = act( LN(x) @ W + b );  LN over the full K (=feature) axis of the x tile.
# The normalized (and bf16-cast) x tile is computed once per row tile (j==0)
# into VMEM scratch and reused across all N tiles.

def _ln_matmul_kernel(*refs, eps, act, has_bias):
    if has_bias:
        x_ref, g_ref, bln_ref, w_ref, b_ref, o_ref, xn_ref = refs
    else:
        x_ref, g_ref, bln_ref, w_ref, o_ref, xn_ref = refs
        b_ref = None

    @pl.when(pl.program_id(1) == 0)
    def _():
        x = x_ref[...].astype(jnp.float32)
        mean = jnp.mean(x, axis=-1, keepdims=True)
        var = jnp.mean(jnp.square(x - mean), axis=-1, keepdims=True)
        xn = (x - mean) * lax.rsqrt(var + eps) * g_ref[...] + bln_ref[...]
        xn_ref[...] = xn.astype(jnp.bfloat16)

    h = jnp.dot(xn_ref[...], w_ref[...].astype(jnp.bfloat16),
                preferred_element_type=jnp.float32)
    if has_bias:
        h = h + b_ref[...]
    if act == "quick_gelu":
        h = h * jax.nn.sigmoid(1.702 * h)      # QuickGELU (CLIP)
    o_ref[...] = h.astype(o_ref.dtype)


def ln_matmul(x, g, b_ln, w, b=None, *, act=None, out_dtype=jnp.bfloat16,
              eps=1e-5, tm_target=128, tn_target=512):
    M, K = x.shape
    Kw, N = w.shape
    assert K == Kw
    # LN is over the full K axis -> K must not be zero-padded.
    assert K % 128 == 0, "LayerNorm feature axis must be a multiple of 128"

    M_pad = _round_up(M, 8)
    N_pad = _round_up(N, 128)
    tm = _choose_tile(M_pad, tm_target, 8)
    tn = _choose_tile(N_pad, tn_target, 128)

    x_p = _pad_to(x, (M_pad, K))
    w_p = _pad_to(w, (K, N_pad))

    in_specs = [
        pl.BlockSpec((tm, K), lambda i, j: (i, 0)),
        pl.BlockSpec((1, K), lambda i, j: (0, 0)),
        pl.BlockSpec((1, K), lambda i, j: (0, 0)),
        pl.BlockSpec((K, tn), lambda i, j: (0, j)),
    ]
    args = [x_p, g.reshape(1, K), b_ln.reshape(1, K), w_p]
    if b is not None:
        in_specs.append(pl.BlockSpec((1, tn), lambda i, j: (0, j)))
        args.append(_pad_to(b.reshape(1, N), (1, N_pad)))

    flops = 2 * M_pad * N_pad * K
    bytes_accessed = int(x_p.size * x_p.dtype.itemsize
                         + w_p.size * w_p.dtype.itemsize
                         + M_pad * N_pad * np.dtype(out_dtype).itemsize)
    out = pl.pallas_call(
        functools.partial(_ln_matmul_kernel, eps=eps, act=act,
                          has_bias=b is not None),
        out_shape=jax.ShapeDtypeStruct((M_pad, N_pad), out_dtype),
        grid=(M_pad // tm, N_pad // tn),
        in_specs=in_specs,
        out_specs=pl.BlockSpec((tm, tn), lambda i, j: (i, j)),
        scratch_shapes=[pltpu.VMEM((tm, K), jnp.bfloat16)],
        compiler_params=pltpu.CompilerParams(
            dimension_semantics=("parallel", "arbitrary")),
        cost_estimate=pl.CostEstimate(flops=flops, transcendentals=M_pad * N_pad,
                                      bytes_accessed=bytes_accessed),
    )(*args)
    if (M_pad, N_pad) != (M, N):
        out = out[:M, :N]
    return out


# ---------------- tiled K-reduction matmul (+bias, +residual) ---------------

def _matmul_kernel(*refs, has_bias, has_res, act):
    i = 0
    x_ref = refs[i]; i += 1
    w_ref = refs[i]; i += 1
    b_ref = None
    r_ref = None
    if has_bias:
        b_ref = refs[i]; i += 1
    if has_res:
        r_ref = refs[i]; i += 1
    o_ref = refs[i]; i += 1
    acc_ref = refs[i]

    k = pl.program_id(2)

    @pl.when(k == 0)
    def _():
        acc_ref[...] = jnp.zeros_like(acc_ref)

    acc_ref[...] += jnp.dot(x_ref[...].astype(jnp.bfloat16),
                            w_ref[...].astype(jnp.bfloat16),
                            preferred_element_type=jnp.float32)

    @pl.when(k == pl.num_programs(2) - 1)
    def _():
        out = acc_ref[...]
        if has_bias:
            out = out + b_ref[...]
        if act == "quick_gelu":
            out = out * jax.nn.sigmoid(1.702 * out)
        if has_res:
            out = out + r_ref[...].astype(jnp.float32)
        o_ref[...] = out.astype(o_ref.dtype)


def matmul(x, w, b=None, residual=None, *, act=None, out_dtype=jnp.bfloat16,
           tm_target=128, tn_target=512, tk_target=512):
    M, K = x.shape
    Kw, N = w.shape
    assert K == Kw

    M_pad = _round_up(M, 8)
    K_pad = _round_up(K, 128)
    N_pad = _round_up(N, 128)
    tm = _choose_tile(M_pad, tm_target, 8)
    tn = _choose_tile(N_pad, tn_target, 128)
    tk = _choose_tile(K_pad, tk_target, 128)
    grid = (M_pad // tm, N_pad // tn, K_pad // tk)

    x_p = _pad_to(x, (M_pad, K_pad))       # zero-padded K contributes nothing
    w_p = _pad_to(w, (K_pad, N_pad))

    in_specs = [
        pl.BlockSpec((tm, tk), lambda i, j, k: (i, k)),
        pl.BlockSpec((tk, tn), lambda i, j, k: (k, j)),
    ]
    args = [x_p, w_p]
    if b is not None:
        in_specs.append(pl.BlockSpec((1, tn), lambda i, j, k: (0, j)))
        args.append(_pad_to(b.reshape(1, N), (1, N_pad)))
    if residual is not None:
        in_specs.append(pl.BlockSpec((tm, tn), lambda i, j, k: (i, j)))
        args.append(_pad_to(residual, (M_pad, N_pad)))

    flops = 2 * M_pad * N_pad * K_pad
    bytes_accessed = int(x_p.size * x_p.dtype.itemsize
                         + w_p.size * w_p.dtype.itemsize
                         + M_pad * N_pad * np.dtype(out_dtype).itemsize)
    out = pl.pallas_call(
        functools.partial(_matmul_kernel, has_bias=b is not None,
                          has_res=residual is not None, act=act),
        out_shape=jax.ShapeDtypeStruct((M_pad, N_pad), out_dtype),
        grid=grid,
        in_specs=in_specs,
        out_specs=pl.BlockSpec((tm, tn), lambda i, j, k: (i, j)),
        scratch_shapes=[pltpu.VMEM((tm, tn), jnp.float32)],
        compiler_params=pltpu.CompilerParams(
            dimension_semantics=("parallel", "parallel", "arbitrary")),
        cost_estimate=pl.CostEstimate(flops=flops, transcendentals=0,
                                      bytes_accessed=bytes_accessed),
    )(*args)
    if (M_pad, N_pad) != (M, N):
        out = out[:M, :N]
    return out


# ----------------- fused (x + pos_emb) followed by LayerNorm ----------------

def _pos_ln_kernel(x_ref, pos_ref, g_ref, b_ref, o_ref, *, eps):
    x = x_ref[0].astype(jnp.float32) + pos_ref[...].astype(jnp.float32)
    mean = jnp.mean(x, axis=-1, keepdims=True)
    var = jnp.mean(jnp.square(x - mean), axis=-1, keepdims=True)
    o_ref[0] = ((x - mean) * lax.rsqrt(var + eps) * g_ref[...]
                + b_ref[...]).astype(o_ref.dtype)


def add_pos_layernorm(x, pos, g, b, *, eps=1e-5, tm_target=256,
                      out_dtype=jnp.bfloat16):
    B, T, D = x.shape
    tm = _choose_tile(T, tm_target, 8)     # T is already a multiple of 128
    return pl.pallas_call(
        functools.partial(_pos_ln_kernel, eps=eps),
        out_shape=jax.ShapeDtypeStruct((B, T, D), out_dtype),
        grid=(B, T // tm),
        in_specs=[pl.BlockSpec((1, tm, D), lambda bi, i: (bi, i, 0)),
                  pl.BlockSpec((tm, D), lambda bi, i: (i, 0)),
                  pl.BlockSpec((1, D), lambda bi, i: (0, 0)),
                  pl.BlockSpec((1, D), lambda bi, i: (0, 0))],
        out_specs=pl.BlockSpec((1, tm, D), lambda bi, i: (bi, i, 0)),
        compiler_params=pltpu.CompilerParams(
            dimension_semantics=("parallel", "parallel")),
    )(x, pos, g.reshape(1, D), b.reshape(1, D))


# -------------------- single-pass attention over packed QKV -----------------
# ViT sequence lengths are tiny: the whole (padded) key axis fits in one VMEM
# block, so no online softmax / kv loop is needed.  Q/K/V head groups are read
# lane-wise straight from the (B, T, 3D) QKV activation; output is written
# head-interleaved into a lane-dense (B, T, D) slab (no XLA head transposes).

def _attn_kernel(q_ref, k_ref, v_ref, o_ref, *, scale, valid_len, kv_len,
                 head_dim, hpb):
    need_mask = valid_len < kv_len
    outs = []
    for h in range(hpb):                              # static unroll over grouped heads
        sl = slice(h * head_dim, (h + 1) * head_dim)
        q = (q_ref[0, :, sl] * scale).astype(jnp.bfloat16)   # scale folded into q
        k = k_ref[0, :, sl].astype(jnp.bfloat16)
        v = v_ref[0, :, sl].astype(jnp.bfloat16)
        # QK^T without materializing a transpose of K.
        s = lax.dot_general(q, k, (((1,), (1,)), ((), ())),
                            preferred_element_type=jnp.float32)   # (tq, kv_len)
        if need_mask:
            key_idx = lax.broadcasted_iota(jnp.int32, s.shape, 1)
            s = jnp.where(key_idx < valid_len, s, -1e30)
        m = jnp.max(s, axis=-1, keepdims=True)
        p = jnp.exp(s - m)
        l = jnp.sum(p, axis=-1, keepdims=True)
        o = jnp.dot(p.astype(jnp.bfloat16), v, preferred_element_type=jnp.float32)
        outs.append(o * pl.reciprocal(l, approx=True))
    out = outs[0] if hpb == 1 else jnp.concatenate(outs, axis=-1)
    o_ref[0] = out.astype(o_ref.dtype)


def mha_from_qkv(qkv, *, heads, head_dim, valid_len, tq_target=256,
                 out_dtype=jnp.bfloat16):
    B, T, threeD = qkv.shape
    D = heads * head_dim
    assert threeD == 3 * D

    # Group heads so each attention block has a lane width that is a multiple
    # of 128 (head_dim=64 -> 2 heads/block, head_dim=128 -> 1 head/block).
    if head_dim % 128 == 0:
        hpb = 1
    elif 128 % head_dim == 0 and heads % (128 // head_dim) == 0:
        hpb = 128 // head_dim
    else:
        hpb = 1  # TODO(synk): head_dim not dividing 128 -> sub-128 lane blocks
    hb = heads // hpb                    # number of head blocks
    hw = hpb * head_dim                  # lane width per block
    tq = _choose_tile(T, tq_target, 128)
    scale = head_dim ** -0.5

    q_map = lambda b, g, qi: (b, qi, g)
    k_map = lambda b, g, qi: (b, 0, hb + g)
    v_map = lambda b, g, qi: (b, 0, 2 * hb + g)
    o_map = lambda b, g, qi: (b, qi, g)

    return pl.pallas_call(
        functools.partial(_attn_kernel, scale=scale, valid_len=valid_len,
                          kv_len=T, head_dim=head_dim, hpb=hpb),
        out_shape=jax.ShapeDtypeStruct((B, T, D), out_dtype),
        grid=(B, hb, T // tq),
        in_specs=[pl.BlockSpec((1, tq, hw), q_map),
                  pl.BlockSpec((1, T, hw), k_map),
                  pl.BlockSpec((1, T, hw), v_map)],
        out_specs=pl.BlockSpec((1, tq, hw), o_map),
        compiler_params=pltpu.CompilerParams(
            dimension_semantics=("parallel", "parallel", "parallel")),
    )(qkv, qkv, qkv)


# ---------------------------- model (glue + kernels) ------------------------

def init_params(key, *, channels, patch, width, heads, layers, out_dim, tokens):
    def nrm(k, shape, scale=0.02, dtype=jnp.float32):
        return (scale * jax.random.normal(k, shape)).astype(dtype)

    keys = jax.random.split(key, 8 + 8 * layers)
    it = iter(keys)
    p = {
        "patch_size": patch,
        "width": width,
        "heads": heads,
        "output_dim": out_dim,
        "conv_w": nrm(next(it), (channels * patch * patch, width), dtype=jnp.bfloat16),
        "class_embedding": nrm(next(it), (width,)),
        "positional_embedding": nrm(next(it), (tokens, width)),
        "ln_pre_g": jnp.ones((width,), jnp.float32),
        "ln_pre_b": jnp.zeros((width,), jnp.float32),
        "ln_post_g": jnp.ones((width,), jnp.float32),
        "ln_post_b": jnp.zeros((width,), jnp.float32),
        "proj": nrm(next(it), (width, out_dim), dtype=jnp.bfloat16),
        "blocks": [],
    }
    for _ in range(layers):
        blk = {
            "ln1_g": jnp.ones((width,), jnp.float32),
            "ln1_b": jnp.zeros((width,), jnp.float32),
            "qkv_w": nrm(next(it), (width, 3 * width), dtype=jnp.bfloat16),
            "qkv_b": jnp.zeros((3 * width,), jnp.float32),
            "out_w": nrm(next(it), (width, width), dtype=jnp.bfloat16),
            "out_b": jnp.zeros((width,), jnp.float32),
            "ln2_g": jnp.ones((width,), jnp.float32),
            "ln2_b": jnp.zeros((width,), jnp.float32),
            "fc_w": nrm(next(it), (width, 4 * width), dtype=jnp.bfloat16),
            "fc_b": jnp.zeros((4 * width,), jnp.float32),
            "proj_w": nrm(next(it), (4 * width, width), dtype=jnp.bfloat16),
            "proj_b": jnp.zeros((width,), jnp.float32),
        }
        p["blocks"].append(blk)
    return p


def resblock(x, p, heads, valid_len):
    B, T, D = x.shape
    Dh = D // heads
    M = B * T
    x2 = x.reshape(M, D)                                     # bf16 residual stream

    # --- multi-head self attention ---
    qkv = ln_matmul(x2, p["ln1_g"], p["ln1_b"], p["qkv_w"], p["qkv_b"],
                    out_dtype=jnp.bfloat16).reshape(B, T, 3 * D)
    attn = mha_from_qkv(qkv, heads=heads, head_dim=Dh,
                        valid_len=valid_len)                 # (B, T, D) bf16
    x2 = matmul(attn.reshape(M, D), p["out_w"], p["out_b"], residual=x2,
                out_dtype=jnp.bfloat16)

    # --- MLP ---
    h = ln_matmul(x2, p["ln2_g"], p["ln2_b"], p["fc_w"], p["fc_b"],
                  act="quick_gelu", out_dtype=jnp.bfloat16)  # (M, 4D)
    x2 = matmul(h, p["proj_w"], p["proj_b"], residual=x2, out_dtype=jnp.bfloat16)

    return x2.reshape(B, T, D)


def encode_image(params, image):
    """ImageEncoder.forward: clip_model.encode_image(image)."""
    B, C, H, W = image.shape
    P = params["patch_size"]
    D = params["width"]
    heads = params["heads"]
    gh, gw = H // P, W // P
    n_patches = gh * gw
    T = n_patches + 1
    T_pad = _round_up(T, 128)      # lane/MXU-friendly query tiles

    # conv1 (stride = kernel = patch, no bias) == patchify + tiled matmul
    patches = image.reshape(B, C, gh, P, gw, P)
    patches = patches.transpose(0, 2, 4, 1, 3, 5).reshape(B * n_patches, C * P * P)
    x = matmul(patches, params["conv_w"], out_dtype=jnp.bfloat16)   # (B*n_patches, D)
    x = x.reshape(B, n_patches, D)

    # prepend class token, pad tokens to T_pad (pad keys masked in attention,
    # pad rows never read at pooling)
    cls = jnp.broadcast_to(params["class_embedding"].astype(jnp.bfloat16), (B, 1, D))
    x = jnp.concatenate([cls, x], axis=1)                           # (B, T, D)
    x = jnp.pad(x, ((0, 0), (0, T_pad - T), (0, 0)))                # (B, T_pad, D)
    pos = jnp.pad(params["positional_embedding"], ((0, T_pad - T), (0, 0)))

    # fused positional-embedding add + ln_pre; bf16 residual stream
    x = add_pos_layernorm(x, pos, params["ln_pre_g"], params["ln_pre_b"])

    for blk in params["blocks"]:
        x = resblock(x, blk, heads, valid_len=T)

    # ln_post on the cls token fused with the output projection (no bias)
    pooled = x[:, 0, :]                                             # (B, D)
    out = ln_matmul(pooled, params["ln_post_g"], params["ln_post_b"],
                    params["proj"], None, out_dtype=jnp.float32)
    return out


# ------------------------------------ main ----------------------------------

if __name__ == "__main__":
    # small but lane-/sublane-friendly shapes: Dh = 128, D multiple of 128
    B, C, H, W = 2, 3, 32, 32
    patch = 16
    width = 256
    heads = 2          # head_dim = 128 (lane-dense attention blocks)
    layers = 2
    out_dim = 128
    tokens = (H // patch) * (W // patch) + 1   # 4 patches + cls = 5

    key = jax.random.PRNGKey(0)
    k_img, k_par = jax.random.split(key)
    image = jax.random.normal(k_img, (B, C, H, W), dtype=jnp.float32)
    params = init_params(
        k_par,
        channels=C,
        patch=patch,
        width=width,
        heads=heads,
        layers=layers,
        out_dim=out_dim,
        tokens=tokens,
    )

    out = encode_image(params, image)
    out = jax.block_until_ready(out)
    assert out.shape == (B, out_dim), out.shape
    assert jnp.all(jnp.isfinite(out))
    print("KERNEL_OK")
</pallas_src>

<mosaic_0001>
module attributes {stable_mosaic.version = 11 : i64} {
  func.func @_matmul_kernel(%arg0: i32, %arg1: i32, %arg2: i32, %arg3: memref<8x384xf32, #tpu.memory_space<vmem>>, %arg4: memref<384x256xbf16, #tpu.memory_space<vmem>>, %arg5: memref<8x256xbf16, #tpu.memory_space<vmem>>, %arg6: memref<8x256xf32, #tpu.memory_space<vmem>>) attributes {dimension_semantics = [#tpu.dimension_semantics<parallel>, #tpu.dimension_semantics<parallel>, #tpu.dimension_semantics<arbitrary>], iteration_bounds = array<i64: 1, 1, 2>, scalar_prefetch = 0 : i64, scratch_operands = 1 : i64, tpu.core_type = #tpu.core_type<tc>, window_params = [{transform_indices = @transform_0, window_bounds = array<i64: 8, 384>}, {transform_indices = @transform_1, window_bounds = array<i64: 384, 256>}, {transform_indices = @transform_2, window_bounds = array<i64: 8, 256>}]} {
    %c0_i32 = arith.constant 0 : i32
    %0 = arith.cmpi eq, %arg2, %c0_i32 : i32
    %1 = arith.extui %0 : i1 to i32
    %c0_i32_0 = arith.constant 0 : i32
    %2 = arith.cmpi ne, %1, %c0_i32_0 : i32
    scf.if %2 {
      %cst_9 = arith.constant 0.000000e+00 : f32
      %13 = vector.broadcast %cst_9 : f32 to vector<8x256xf32>
      %c0_10 = arith.constant 0 : index
      %c0_11 = arith.constant 0 : index
      %14 = vector.load %arg6[%c0_10, %c0_11] : memref<8x256xf32, #tpu.memory_space<vmem>>, vector<8x256xf32>
      tpu.vector_store %arg6[%c0_10, %c0_11], %13 {strides = array<i32>} : memref<8x256xf32, #tpu.memory_space<vmem>>, vector<8x256xf32>,
    } else {
    }
    %c0 = arith.constant 0 : index
    %c0_1 = arith.constant 0 : index
    %3 = vector.load %arg6[%c0, %c0_1] : memref<8x256xf32, #tpu.memory_space<vmem>>, vector<8x256xf32>
    %c0_2 = arith.constant 0 : index
    %c0_3 = arith.constant 0 : index
    %4 = vector.load %arg3[%c0_2, %c0_3] : memref<8x384xf32, #tpu.memory_space<vmem>>, vector<8x384xf32>
    %5 = arith.truncf %4 : vector<8x384xf32> to vector<8x384xbf16>
    %c0_4 = arith.constant 0 : index
    %c0_5 = arith.constant 0 : index
    %6 = vector.load %arg4[%c0_4, %c0_5] : memref<384x256xbf16, #tpu.memory_space<vmem>>, vector<384x256xbf16>
    %cst = arith.constant dense<0.000000e+00> : vector<8x256xf32>
    %7 = tpu.matmul %5, %6, %cst {dimension_numbers = #tpu.dot_dimension_numbers<[1], [0], [0], [1], [0, 0, 1, 1], [], []>} : vector<8x384xbf16>, vector<384x256xbf16>, vector<8x256xf32> -> vector<8x256xf32>
    %8 = arith.addf %3, %7 : vector<8x256xf32>
    %c0_6 = arith.constant 0 : index
    %c0_7 = arith.constant 0 : index
    %9 = vector.load %arg6[%c0_6, %c0_7] : memref<8x256xf32, #tpu.memory_space<vmem>>, vector<8x256xf32>
    tpu.vector_store %arg6[%c0_6, %c0_7], %8 {strides = array<i32>} : memref<8x256xf32, #tpu.memory_space<vmem>>, vector<8x256xf32>,
    %c1_i32 = arith.constant 1 : i32
    %10 = arith.cmpi eq, %arg2, %c1_i32 : i32
    %11 = arith.extui %10 : i1 to i32
    %c0_i32_8 = arith.constant 0 : i32
    %12 = arith.cmpi ne, %11, %c0_i32_8 : i32
    scf.if %12 {
      %c0_9 = arith.constant 0 : index
      %c0_10 = arith.constant 0 : index
      %13 = vector.load %arg6[%c0_9, %c0_10] : memref<8x256xf32, #tpu.memory_space<vmem>>, vector<8x256xf32>
      %14 = arith.truncf %13 : vector<8x256xf32> to vector<8x256xbf16>
      %c0_11 = arith.constant 0 : index
      %c0_12 = arith.constant 0 : index
      %15 = vector.load %arg5[%c0_11, %c0_12] : memref<8x256xbf16, #tpu.memory_space<vmem>>, vector<8x256xbf16>
      tpu.vector_store %arg5[%c0_11, %c0_12], %14 {strides = array<i32>} : memref<8x256xbf16, #tpu.memory_space<vmem>>, vector<8x256xbf16>,
    } else {
    }
    return
  }
  func.func @transform_0(%arg0: i32, %arg1: i32, %arg2: i32) -> (i32, i32) {
    %c0_i32 = arith.constant 0 : i32
    return %arg0, %arg2 : i32, i32
  }
  func.func @transform_1(%arg0: i32, %arg1: i32, %arg2: i32) -> (i32, i32) {
    %c0_i32 = arith.constant 0 : i32
    return %arg2, %arg1 : i32, i32
  }
  func.func @transform_2(%arg0: i32, %arg1: i32, %arg2: i32) -> (i32, i32) {
    %c0_i32 = arith.constant 0 : i32
    return %arg0, %arg1 : i32, i32
  }
}

</mosaic_0001>

<bundles_post_ra>
// kernel: tpu_custom_call.1
= control target key start
LH: loop header
LB: loop body
LE: loop exit
PB: predicated region body
PF: predicated region fallthrough
CT: control target
= control target key end

     0   :  { %7 = vsyncpa [#allocation4], 0  ;;  %s1371_s0 = inlined_call_operand.hbm [shape: f32[8,768], index: 0, kind: input, shape index: {}]   ;;  %s1372_s1 = inlined_call_operand.hbm [shape: bf16[768,256], index: 1, kind: input, shape index: {}]   ;;  %s1373_s2 = inlined_call_operand.hbm [shape: bf16[8,256], index: 2, kind: output, shape index: {}]  }
   0x1   :  { %9 = vsyncpa [#allocation4 + $0x1], 0 }
   0x2   :  { %10 = vsyncpa [#allocation7], 0 }
   0x3   :  { %12 = vsyncpa [#allocation7 + $0x1], 0 }
   0x4   :  { %13 = vsyncpa [#allocation5], 0  ;;  %s1121_s9 = smov 0   ;;  %s1123_s10 = smov 0  }
   0x5   :  { %s1125_s11 = smov 0   ;;  %s1127_s12 = smov 0  }
   0x6   :  { %s1129_s13 = smov 0   ;;  %s1131_s14 = smov 0  }
   0x7 LB: > { %s739_s15 = sadd.s32 4294967295, %s1097_s14   ;;  %s31_s16 = sadd.s32 1, %s1093_s13  ;;  %s1097_s14 = sphi %s1131_s14, %s19_s14   ;;  %s1093_s13 = sphi %s1129_s13, %s1386_s13   ;;  %s1089_s12 = sphi %s1127_s12, %s1385_s12   ;;  %s1085_s11 = sphi %s1125_s11, %s1384_s11   ;;  %s1081_s10 = sphi %s1123_s10, %s1383_s10   ;;  %s1077_s9 = sphi %s1121_s9, %s1382_s9  }
   0x8   : > { %p32_p0 = scmp.ge.s32.totalorder %s31_s16, 2  ;;  %s47_s17 = sadd.s32 1, %s1085_s11 }
   0x9   : > { %p54_p1 = scmp.ne.s32.totalorder %s1085_s11, %s1081_s10  ;;  %p55_p2 = scmp.eq.s32.totalorder %s1097_s14, 0 }
   0xa   : > { %s1388_s16 = smov (%p32_p0, %s31_s16), 0  ;;  %p60_p4 = scmp.ne.s32.totalorder %s1081_s10, %s1077_s9 }
   0xb   : > { %p56_p3 = por %p55_p2, %p54_p1  ;;  %s43_s18 = ssub.s32 %s1093_s13, %s1388_s16 }
   0xc   : > { %p61_p5 = scmp.eq.s32.totalorder %s739_s15, 0  ;;  %p45_p6 = scmp.eq.s32.totalorder %s43_s18, 0 }
   0xd   : > { %p825_p8 = scmp.lt.s32.totalorder %s1097_s14, 2  ;;  %s1171_s21 = sand.u32 1, %s1085_s11  }
   0xe   : > { %p1162_p7 = por %p61_p5, %p60_p4  ;;  %s801_s22 = smul.u32 384, %s1093_s13 }
   0xf   : > { %s1168_s20 = scalar_select %p45_p6, %s1085_s11, %s47_s17  }
  0x10   : > { %s1375_s19 = scalar_select %p1162_p7, 1, 0 }
  0x11   : > { %s806_s23 = smul.u32 24, %s1171_s21  ;;  %s1178_s26 = scalar_lea.hbm %s1371_s0, %s801_s22 }
  0x12   : > { %p1180_p9 = pnand %p825_p8, %p56_p3  ;;  %s141_s30 = scalar_lea.sflag [#allocation4], %s1171_s21 }
  0x13   : > { %s144_s28 = scalar_lea.vmem [#allocation3], %s806_s23  ;;  %s953_s3 = scalar_lea.hbm %s1178_s26, 384 }
  0x14   : > { %s154_s29 = sshll.u32 %s144_s28, 4  ;;  %p954_p12 = scmp.ne.s32.totalorder %s1178_s26, %s953_s3  ;;  %s1185_s29 = int_to_ptr.vmem [resolvable:$true] %s154_s29 }
  0x15   : > { %p955_p13 = pneg %p1180_p9  ;;  %s958_s6 = scalar_lea.hbm %s1371_s0, 768 }
  0x16   : > { %p959_p2 = scmp.lt.u32.totalorder %s1178_s26, %s1371_s0  ;;  %p960_p3 = scmp.lt.u32.totalorder %s958_s6, %s953_s3 }
  0x17   : > { %p956_p0 = pnand %p955_p13, %p954_p12  ;;  %p962_p5 = scmp.lt.u32.totalorder %s953_s3, %s1178_s26 }
  0x18   : > { %p961_p4 = por %p960_p3, %p959_p2 }
  0x19   : > { %p957_p1 = pneg %p956_p0 }
  0x1a   : > { %p963_p6 = por %p962_p5, %p961_p4 }
  0x1c   : > { %p964_p8 = pnand %p963_p6, %p957_p1 }
  0x1e   : > { %967 = shalt.err (!%p964_p8)
}
  0x1f   : > { %s968_s9 = scalar_lea.vmem %s1185_s29, 384  ;;  %s1099_s17 = smov [#allocation3]  }
  0x20   : > { %p969_p12 = scmp.ne.s32.totalorder %s1185_s29, %s968_s9  ;;  %s973_s18 = sshll.u32 %s1099_s17, 4  ;;  %s974_s18 = int_to_ptr.vmem [resolvable:$false] %s973_s18 }
  0x21   : > { %s975_s22 = scalar_lea.vmem %s974_s18, 768  ;;  %p976_p11 = scmp.lt.s32.totalorder %s1185_s29, %s974_s18 }
  0x22   : > { %p971_p0 = pnand %p969_p12, %p955_p13  ;;  %p977_p2 = scmp.lt.s32.totalorder %s975_s22, %s968_s9 }
  0x24   : > { %p972_p10 = pneg %p971_p0  ;;  %p978_p3 = por %p977_p2, %p976_p11 }
  0x26   : > { %p979_p4 = pnand %p978_p3, %p972_p10 }
  0x28   : > { %982 = shalt.err (!%p979_p4)
}
  0x29   : > { %821 = dma.hbm_to_vmem [thread:$0]  (!%p1180_p9), %s1178_s26, 384, %s1185_s29, %s141_s30  }
  0x2a   : > { %p1377_p1 = scmp.lt.s32.totalorder %s1097_s14, 3  ;;  %p1378_p5 = scmp.ge.s32.totalorder %s1097_s14, 1 }
  0x2b   : > { %s807_s24 = smul.u32 384, %s1171_s21  ;;  %s162_s26 = scalar_lea.sflag [#allocation7], %s1171_s21 }
  0x2c   : > { %p1218_p6 = pnand %p1378_p5, %p1377_p1  ;;  %s805_s25 = smul.u32 6144, %s1093_s13 }
  0x2d   : > { %s165_s5 = scalar_lea.vmem [#allocation6], %s807_s24  ;;  %s988_s8 = scalar_lea.hbm %s1372_s1, 12288 }
  0x2e   : > { %s1227_s4 = scalar_lea.hbm %s1372_s1, %s805_s25  ;;  %s175_s6 = sshll.u32 %s165_s5, 4  ;;  %s1229_s6 = int_to_ptr.vmem [resolvable:$true] %s175_s6 }
  0x2f   : > { %s983_s29 = scalar_lea.hbm %s1227_s4, 6144  ;;  %p989_p12 = scmp.lt.u32.totalorder %s1227_s4, %s1372_s1 }
  0x30   : > { %p984_p10 = scmp.ne.s32.totalorder %s1227_s4, %s983_s29  ;;  %p990_p0 = scmp.lt.u32.totalorder %s988_s8, %s983_s29 }
  0x31   : > { %p992_p3 = scmp.lt.u32.totalorder %s983_s29, %s1227_s4 }
  0x32   : > { %p986_p11 = pnand %p984_p10, %p955_p13  ;;  %p991_p2 = por %p990_p0, %p989_p12 }
  0x34   : > { %p987_p8 = pneg %p986_p11  ;;  %p993_p4 = por %p992_p3, %p991_p2 }
  0x36   : > { %p994_p1 = pnand %p993_p4, %p987_p8 }
  0x38   : > { %997 = shalt.err (!%p994_p1)
}
  0x39   : > { %s998_s18 = scalar_lea.vmem %s1229_s6, 6144  ;;  %s1100_s22 = smov [#allocation6]  }
  0x3a   : > { %p999_p5 = scmp.ne.s32.totalorder %s1229_s6, %s998_s18  ;;  %s1003_s24 = sshll.u32 %s1100_s22, 4  ;;  %s1004_s24 = int_to_ptr.vmem [resolvable:$false] %s1003_s24 }
  0x3b   : > { %s1005_s25 = scalar_lea.vmem %s1004_s24, 12288  ;;  %p1006_p7 = scmp.lt.s32.totalorder %s1229_s6, %s1004_s24 }
  0x3c   : > { %p1001_p10 = pnand %p999_p5, %p955_p13  ;;  %p1007_p12 = scmp.lt.s32.totalorder %s1005_s25, %s998_s18 }
  0x3e   : > { %p1002_p11 = pneg %p1001_p10  ;;  %p1008_p0 = por %p1007_p12, %p1006_p7 }
  0x40   : > { %p1009_p2 = pnand %p1008_p0, %p1002_p11 }
  0x42   : > { %1012 = shalt.err (!%p1009_p2)
}
  0x43   : > { %s1101_s28 = smov 128   ;;  %s1102_s3 = smov 8  }
  0x44   : > { %824 = dma.hbm_to_vmem [thread:$0]  (!%p1180_p9), %s1227_s4, 6144, %s1229_s6, %s162_s26, %s1101_s28, %s1101_s28, %s1102_s3  }
  0x45   : > { %187 = sbr.rel (%p1218_p6) target bundleno = 408 (0x198), region = 28  ;;  %s189_s5 = sand.u32 (!%p1218_p6), 1, %s1081_s10  }
  0x46   : > { %s808_s29 = smul.u32 (!%p1218_p6), 24, %s189_s5  ;;  %s190_s30 = scalar_lea.sflag (!%p1218_p6), [#allocation4], %s189_s5 }
  0x47   : > { %p1380_p7 = scmp.ne.s32.totalorder (!%p1218_p6), %s1375_s19, 0 }
  0x48   : > { %s1260_s7 = scalar_lea.vmem (!%p1218_p6), [#allocation3], %s808_s29 }
  0x4c   : > { %1064 = dma.done.wait (%p1380_p7), %s190_s30, 384  }
  0x4d   : > { %1066 = vsyncadd (%p1380_p7), %s190_s30, 4294966912  ;;  %s809_s8 = smul.u32 384, %s189_s5  ;;  %s199_s27 = scalar_lea.sflag [#allocation7], %s189_s5 }
  0x4f   : > { %s1266_s21 = scalar_lea.vmem [#allocation6], %s809_s8 }
  0x50   : > { %1068 = dma.done.wait (%p1380_p7), %s199_s27, 6144  }
  0x51   : > { %1070 = vsyncadd (%p1380_p7), %s199_s27, 4294961152  ;;  %p746_p9 = scmp.ne.s32.totalorder %s1089_s12, 0 }
  0x52   : > { %v1103_v0 = vmov (!%p746_p9), 0.0  }
  0x53   : > { %231 = sbr.rel (%p746_p9) target bundleno = 90 (0x5a), region = 40  ;;  %232 = vst [vmem:[#allocation2] sm:$0xff] (!%p746_p9), %v1103_v0  ;;  %233 = vst [vmem:[#allocation2 + $0x8] sm:$0xff] (!%p746_p9), %v1103_v0 }
  0x5a PF: > { %v881_v1 = vld [vmem:[%s1266_s21 + $0x4] ss:$8 sps:$4 sm:$0xff]   ;;  %v883_v2 = vld [vmem:[%s1266_s21] ss:$8 sps:$4 sm:$0xff]   ;;  %v1104_v3 = vmov 0   ;;  %v237_v34 = vld [vmem:[%s1260_s7 + $0x8] sm:$0xff] }
  0x5b   : > { %603 = vmatprep.mubr.bf16.mxu1 %v1104_v3  ;;  %530 = vmatprep.subr.bf16.mxu0 %v881_v1  ;;  %v884_v4 = vld [vmem:[%s1266_s21 + $0x14] ss:$8 sps:$4 sm:$0xff]   ;;  %v886_v5 = vld [vmem:[%s1266_s21 + $0x10] ss:$8 sps:$4 sm:$0xff]   ;;  %v887_v6 = vld [vmem:[%s1266_s21 + $0x24] ss:$8 sps:$4 sm:$0xff]   ;;  %v240_v35 = vpack.c.bf16 %v237_v34, %v237_v34 }
  0x5c   : > { %531 = vmatpush1.bf16.msra.mxu0 %v883_v2  ;;  %v889_v7 = vld [vmem:[%s1266_s21 + $0x20] ss:$8 sps:$4 sm:$0xff]   ;;  %v890_v8 = vld [vmem:[%s1266_s21 + $0x34] ss:$8 sps:$4 sm:$0xff]   ;;  %v892_v9 = vld [vmem:[%s1266_s21 + $0x30] ss:$8 sps:$4 sm:$0xff]  }
  0x5d   : > { %532 = vmatprep.subr.bf16.mxu0 %v884_v4  ;;  %v905_v10 = vld [vmem:[%s1266_s21 + $0x104] ss:$8 sps:$4 sm:$0xff]   ;;  %v907_v11 = vld [vmem:[%s1266_s21 + $0x100] ss:$8 sps:$4 sm:$0xff]   ;;  %v911_v13 = vld [vmem:[%s1266_s21 + $0x114] ss:$8 sps:$4 sm:$0xff]   ;;  %562 = vmatprep.mubr.bf16.mxu0 %v240_v35 }
  0x5e   : > { %v893_v12 = vld [vmem:[%s1266_s21 + $0x44] ss:$8 sps:$4 sm:$0xff]   ;;  %571 = vmatprep.subr.bf16.mxu1 %v905_v10  ;;  %v913_v14 = vld [vmem:[%s1266_s21 + $0x110] ss:$8 sps:$4 sm:$0xff]   ;;  %v895_v15 = vld [vmem:[%s1266_s21 + $0x40] ss:$8 sps:$4 sm:$0xff]  }
  0x5f   : > { %572 = vmatpush1.bf16.msra.mxu1 %v907_v11  ;;  %v896_v16 = vld [vmem:[%s1266_s21 + $0x54] ss:$8 sps:$4 sm:$0xff]   ;;  %v917_v17 = vld [vmem:[%s1266_s21 + $0x124] ss:$8 sps:$4 sm:$0xff]   ;;  %v919_v18 = vld [vmem:[%s1266_s21 + $0x120] ss:$8 sps:$4 sm:$0xff]  }
  0x60   : > { %533 = vmatpush1.bf16.msra.mxu0 %v886_v5  ;;  %573 = vmatprep.subr.bf16.mxu1 %v911_v13  ;;  %v898_v19 = vld [vmem:[%s1266_s21 + $0x50] ss:$8 sps:$4 sm:$0xff]   ;;  %v923_v20 = vld [vmem:[%s1266_s21 + $0x134] ss:$8 sps:$4 sm:$0xff]   ;;  %v899_v21 = vld [vmem:[%s1266_s21 + $0x64] ss:$8 sps:$4 sm:$0xff]  }
  0x61   : > { %534 = vmatprep.subr.bf16.mxu0 %v887_v6  ;;  %v925_v22 = vld [vmem:[%s1266_s21 + $0x130] ss:$8 sps:$4 sm:$0xff]   ;;  %v901_v23 = vld [vmem:[%s1266_s21 + $0x60] ss:$8 sps:$4 sm:$0xff]   ;;  %v929_v24 = vld [vmem:[%s1266_s21 + $0x144] ss:$8 sps:$4 sm:$0xff]  }
  0x62   : > { %v902_v25 = vld [vmem:[%s1266_s21 + $0x74] ss:$8 sps:$4 sm:$0xff]   ;;  %v931_v26 = vld [vmem:[%s1266_s21 + $0x140] ss:$8 sps:$4 sm:$0xff]   ;;  %v904_v27 = vld [vmem:[%s1266_s21 + $0x70] ss:$8 sps:$4 sm:$0xff]  }
  0x63   : > { %574 = vmatpush1.bf16.msra.mxu1 %v913_v14  ;;  %v935_v28 = vld [vmem:[%s1266_s21 + $0x154] ss:$8 sps:$4 sm:$0xff]   ;;  %v908_v29 = vld [vmem:[%s1266_s21 + $0x84] ss:$8 sps:$4 sm:$0xff]   ;;  %v937_v30 = vld [vmem:[%s1266_s21 + $0x150] ss:$8 sps:$4 sm:$0xff]  }
  0x64   : > { %535 = vmatpush1.bf16.msra.mxu0 %v889_v7  ;;  %575 = vmatprep.subr.bf16.mxu1 %v917_v17  ;;  %v910_v31 = vld [vmem:[%s1266_s21 + $0x80] ss:$8 sps:$4 sm:$0xff]   ;;  %v941_v32 = vld [vmem:[%s1266_s21 + $0x164] ss:$8 sps:$4 sm:$0xff]   ;;  %v914_v33 = vld [vmem:[%s1266_s21 + $0x94] ss:$8 sps:$4 sm:$0xff]  }
  0x65   : > { %536 = vmatprep.subr.bf16.mxu0 %v890_v8  ;;  %v943_v36 = vld [vmem:[%s1266_s21 + $0x160] ss:$8 sps:$4 sm:$0xff]   ;;  %v916_v37 = vld [vmem:[%s1266_s21 + $0x90] ss:$8 sps:$4 sm:$0xff]   ;;  %v947_v38 = vld [vmem:[%s1266_s21 + $0x174] ss:$8 sps:$4 sm:$0xff]  }
  0x66   : > { %v920_v39 = vld [vmem:[%s1266_s21 + $0xa4] ss:$8 sps:$4 sm:$0xff]   ;;  %v949_v40 = vld [vmem:[%s1266_s21 + $0x170] ss:$8 sps:$4 sm:$0xff]   ;;  %v922_v42 = vld [vmem:[%s1266_s21 + $0xa0] ss:$8 sps:$4 sm:$0xff]  }
  0x67   : > { %576 = vmatpush1.bf16.msra.mxu1 %v919_v18  ;;  %v238_v41 = vld [vmem:[%s1260_s7 + $0x10] sm:$0xff]  ;;  %v236_v54 = vld [vmem:[%s1260_s7] sm:$0xff]  ;;  %p795_p13 = scmp.ne.s32.totalorder %s1089_s12, 1 }
  0x68   : > { %537 = vmatpush1.bf16.msra.mxu0 %v892_v9  ;;  %577 = vmatprep.subr.bf16.mxu1 %v923_v20  ;;  %v926_v43 = vld [vmem:[%s1266_s21 + $0xb4] ss:$8 sps:$4 sm:$0xff]   ;;  %v241_v44 = vpack.c.bf16 %v238_v41, %v238_v41  ;;  %v928_v45 = vld [vmem:[%s1266_s21 + $0xb0] ss:$8 sps:$4 sm:$0xff]   ;;  %v932_v46 = vld [vmem:[%s1266_s21 + $0xc4] ss:$8 sps:$4 sm:$0xff]   ;;  %v239_v55 = vpack.c.bf16 %v236_v54, %v236_v54 }
  0x69   : > { %538 = vmatprep.subr.bf16.mxu0 %v893_v12  ;;  %v934_v47 = vld [vmem:[%s1266_s21 + $0xc0] ss:$8 sps:$4 sm:$0xff]   ;;  %v938_v48 = vld [vmem:[%s1266_s21 + $0xd4] ss:$8 sps:$4 sm:$0xff]   ;;  %v940_v49 = vld [vmem:[%s1266_s21 + $0xd0] ss:$8 sps:$4 sm:$0xff]  }
  0x6a   : > { %v944_v50 = vld [vmem:[%s1266_s21 + $0xe4] ss:$8 sps:$4 sm:$0xff]   ;;  %v946_v51 = vld [vmem:[%s1266_s21 + $0xe0] ss:$8 sps:$4 sm:$0xff]   ;;  %v950_v52 = vld [vmem:[%s1266_s21 + $0xf4] ss:$8 sps:$4 sm:$0xff]  }
  0x6b   : > { %578 = vmatpush1.bf16.msra.mxu1 %v925_v22  ;;  %v952_v53 = vld [vmem:[%s1266_s21 + $0xf0] ss:$8 sps:$4 sm:$0xff]   ;;  %v234_v60 = vld [vmem:[#allocation2] sm:$0xff]  ;;  %v235_v63 = vld [vmem:[#allocation2 + $0x8] sm:$0xff] }
  0x6c   : > { %539 = vmatpush1.bf16.msra.mxu0 %v895_v15  ;;  %579 = vmatprep.subr.bf16.mxu1 %v929_v24 }
  0x6d   : > { %540 = vmatprep.subr.bf16.mxu0 %v896_v16 }
  0x6f   : > { %580 = vmatpush1.bf16.msra.mxu1 %v931_v26 }
  0x70   : > { %541 = vmatpush1.bf16.msra.mxu0 %v898_v19  ;;  %581 = vmatprep.subr.bf16.mxu1 %v935_v28 }
  0x71   : > { %542 = vmatprep.subr.bf16.mxu0 %v899_v21 }
  0x73   : > { %582 = vmatpush1.bf16.msra.mxu1 %v937_v30 }
  0x74   : > { %543 = vmatpush1.bf16.msra.mxu0 %v901_v23  ;;  %583 = vmatprep.subr.bf16.mxu1 %v941_v32 }
  0x75   : > { %544 = vmatprep.subr.bf16.mxu0 %v902_v25 }
  0x77   : > { %584 = vmatpush1.bf16.msra.mxu1 %v943_v36 }
  0x78   : > { %545 = vmatpush1.bf16.msra.mxu0 %v904_v27  ;;  %585 = vmatprep.subr.bf16.mxu1 %v947_v38 }
  0x79   : > { %546 = vmatprep.subr.bf16.mxu0 %v908_v29 }
  0x7b   : > { %586 = vmatpush1.bf16.msra.mxu1 %v949_v40 }
  0x7c   : > { %547 = vmatpush1.bf16.msra.mxu0 %v910_v31 }
  0x7d   : > { %548 = vmatprep.subr.bf16.mxu0 %v914_v33 }
  0x7e   : > { %604 = vmatmul.mubr.bf16.vlgmr.msra.gmra.mrb[0].mxu1 %v241_v44 }
  0x80   : > { %549 = vmatpush1.bf16.msra.mxu0 %v916_v37 }
  0x81   : > { %550 = vmatprep.subr.bf16.mxu0 %v920_v39 }
  0x84   : > { %551 = vmatpush1.bf16.msra.mxu0 %v922_v42 }
  0x85   : > { %552 = vmatprep.subr.bf16.mxu0 %v926_v43 }
  0x88   : > { %553 = vmatpush1.bf16.msra.mxu0 %v928_v45 }
  0x89   : > { %554 = vmatprep.subr.bf16.mxu0 %v932_v46 }
  0x8c   : > { %555 = vmatpush1.bf16.msra.mxu0 %v934_v47 }
  0x8d   : > { %556 = vmatprep.subr.bf16.mxu0 %v938_v48 }
  0x90   : > { %557 = vmatpush1.bf16.msra.mxu0 %v940_v49 }
  0x91   : > { %558 = vmatprep.subr.bf16.mxu0 %v944_v50 }
  0x94   : > { %559 = vmatpush1.bf16.msra.mxu0 %v946_v51 }
  0x95   : > { %560 = vmatprep.subr.bf16.mxu0 %v950_v52 }
  0x98   : > { %561 = vmatpush1.bf16.msra.mxu0 %v952_v53 }
  0x9b   : > { %563 = vmatmul.mubr.bf16.vlgmr.msra.gmra.mrb[0].mxu0 %v239_v55 }
 0x151   : > { %v605_v56 = vpop.f32.mrb[0].mxu1 }
 0x152   : > { %v607_v57 = vpop.f32.mrb[1].mxu1 }
 0x153   : > { %v609_v58 = vpop.f32.mrb[2].mxu1 }
 0x154   : > { %v610_v59 = vpop.f32.mrb[3].mxu1 }
 0x16e   : > { %v564_v61 = vpop.f32.mrb[0].mxu0  ;;  %619 = sbr.rel (%p795_p13) target bundleno = 383 (0x17f), region = 44 }
 0x16f   : > { %v606_v62 = vadd.f32 %v605_v56, %v564_v61  ;;  %v566_v0 = vpop.f32.mrb[1].mxu0 }
 0x170   : > { %v608_v1 = vadd.f32 %v607_v57, %v566_v0  ;;  %v568_v2 = vpop.f32.mrb[2].mxu0 }
 0x171   : > { %v612_v3 = vadd.f32 %v606_v62, %v234_v60  ;;  %v569_v4 = vpop.f32.mrb[3].mxu0 }
 0x172   : > { %v613_v5 = vadd.f32 %v608_v1, %v235_v63 }
 0x173   : > { %614 = vst [vmem:[#allocation2] sm:$0xff] %v612_v3 }
 0x174   : > { %615 = vst [vmem:[#allocation2 + $0x8] sm:$0xff] %v613_v5 }
 0x17a   : > { %v620_v6 = vld [vmem:[#allocation2] sm:$0xff] }
 0x17b   : > { %v621_v7 = vld [vmem:[#allocation2 + $0x8] sm:$0xff] }
 0x17c   : > { %v804_v8 = vpack.c.bf16 %v621_v7, %v620_v6 }
 0x17e   : > { %630 = vst [vmem:[#allocation8] sm:$0xff] %v804_v8 }
 0x17f PF: > { %p1327_p6 = scmp.eq.s32.totalorder %s739_s15, 1  ;;  %s1105_s23 = smov [#allocation8]  }
 0x180   : > { %s643_s4 = sshll.u32 %s1105_s23, 4  ;;  %s644_s4 = int_to_ptr.vmem [resolvable:$true] %s643_s4 }
 0x181   : > { %s1013_s6 = scalar_lea.vmem %s644_s4, 128  ;;  %p1020_p1 = scmp.lt.s32.totalorder %s644_s4, %s644_s4 }
 0x182   : > { %p1014_p8 = scmp.ne.s32.totalorder %s644_s4, %s1013_s6  ;;  %p1021_p5 = scmp.lt.s32.totalorder %s1013_s6, %s1013_s6 }
 0x184   : > { %p1015_p3 = pnand %p1014_p8, %p1327_p6  ;;  %p1022_p10 = por %p1021_p5, %p1020_p1 }
 0x186   : > { %p1016_p4 = pneg %p1015_p3 }
 0x188   : > { %p1023_p11 = pnand %p1022_p10, %p1016_p4 }
 0x18a   : > { %1026 = shalt.err (!%p1023_p11)
}
 0x18b   : > { %s1027_s15 = scalar_lea.hbm %s1373_s2, 128 }
 0x18c   : > { %p1028_p12 = scmp.ne.s32.totalorder %s1373_s2, %s1027_s15  ;;  %p1033_p7 = scmp.lt.u32.totalorder %s1027_s15, %s1373_s2 }
 0x18e   : > { %p1029_p0 = pnand %p1028_p12, %p1327_p6 }
 0x190   : > { %p1030_p2 = pneg %p1029_p0 }
 0x192   : > { %p1035_p9 = pnand %p1033_p7, %p1030_p2 }
 0x194   : > { %1038 = shalt.err (!%p1035_p9)
}
 0x195   : > { %815 = dma.vmem_to_hbm [thread:$0]  (%p1327_p6), %s644_s4, 128, %s1373_s2, [#allocation5]  }
 0x196   : > { %1072 = dma.done.wait (%p1327_p6), [#allocation5], 128  }
 0x197   : > { %1074 = vsyncadd (%p1327_p6), [#allocation5], 4294967168 }
 0x198 PF: > { %s19_s14 = sadd.s32 1, %s1097_s14   ;;  %s1382_s9 = smov %s1081_s10 }
 0x199   : > { %p16_p13 = scmp.ge.s32.totalorder %s19_s14, 4   ;;  %s1383_s10 = smov %s1085_s11 }
 0x19a   : > { %s1384_s11 = smov %s1168_s20  ;;  %s1385_s12 = smov %s1093_s13 }
 0x19b   : > { %s1386_s13 = smov %s1388_s16  ;;  %18 = sbr.rel (!%p16_p13) target bundleno = 7 (0x7), region = 87 }
 0x1a2   :  { %656 = vsyncpa [#allocation4], 1 }
 0x1a3   :  { %658 = vsyncpa [#allocation4 + $0x1], 1 }
 0x1a4   :  { %659 = vsyncpa [#allocation7], 1 }
 0x1a5   :  { %661 = vsyncpa [#allocation7 + $0x1], 1 }
 0x1a6   :  { %662 = vsyncpa [#allocation5], 1 }
 0x1a7   :  { %664 = vsyncpa [#allocation5 + $0x1], 1 }

</bundles_post_ra>
